<compile_context>
chip_gen: v6e
topology: v6e:2x2x1
jax: 0.10.0
libtpu: 0.0.40
codegen_flags: <defaults>
</compile_context>

<pallas_src>
import functools

import jax
import jax.numpy as jnp
from jax.experimental import pallas as pl
from jax.experimental.pallas import tpu as pltpu


def _round_up(n: int, m: int) -> int:
    return ((n + m - 1) // m) * m


def _fused_mlp_kernel(*refs, relu_flags, compute_dtype):
    # refs = (x_ref, w0_ref, b0_ref, w1_ref, b1_ref, ..., o_ref)
    x_ref = refs[0]
    o_ref = refs[-1]
    wb_refs = refs[1:-1]

    h = x_ref[...]
    for li, relu in enumerate(relu_flags):
        w_ref = wb_refs[2 * li]
        b_ref = wb_refs[2 * li + 1]
        # MXU matmul with f32 accumulation; bias + ReLU in f32.
        y = jnp.dot(
            h.astype(compute_dtype),
            w_ref[...].astype(compute_dtype),
            preferred_element_type=jnp.float32,
        )
        y = y + b_ref[...].astype(jnp.float32)
        if relu:
            y = jnp.maximum(y, 0.0)
        h = y  # stays on-chip; never written back to HBM
    o_ref[...] = h.astype(o_ref.dtype)


def mlp_forward(x, params, *, tile_m=256, compute_dtype=None):
    """Fused MLP forward.

    x:      [B, input_size]
    params: list of (w [in, out], b [1, out], relu_after: bool) in application
            order (ReLU fused into the Linear it immediately follows).
    compute_dtype: dtype of the matmul operands (e.g. jnp.bfloat16 on v6e/v7x
            for ~2x MXU throughput). Accumulation is always f32.
    """
    assert len(params) > 0
    B, IN = x.shape
    dtype = x.dtype
    if compute_dtype is None:
        compute_dtype = dtype

    # ---- padding: feature dims -> multiples of 128 (lane-dense), batch -> tm ----
    dims = [IN] + [w.shape[1] for (w, _, _) in params]
    pdims = [_round_up(d, 128) for d in dims]
    tm = min(_round_up(B, 8), max(8, tile_m))  # batch tile, multiple of 8
    Bp = _round_up(B, tm)

    xp = jnp.zeros((Bp, pdims[0]), dtype).at[:B, :IN].set(x)

    wb_inputs = []
    for li, (w, b, _) in enumerate(params):
        fi, fo = w.shape
        pfi, pfo = pdims[li], pdims[li + 1]
        wp = jnp.zeros((pfi, pfo), w.dtype).at[:fi, :fo].set(w)
        bp = jnp.zeros((1, pfo), b.dtype).at[:, :fo].set(b)
        wb_inputs += [wp, bp]

    relu_flags = tuple(bool(r) for (_, _, r) in params)
    OUT, OUTp = dims[-1], pdims[-1]

    # ---- grid / block specs ----
    grid = (Bp // tm,)
    in_specs = [pl.BlockSpec((tm, pdims[0]), lambda i: (i, 0))]  # x: tiled over batch
    for li in range(len(params)):
        pfi, pfo = pdims[li], pdims[li + 1]
        # Weights / biases: grid-invariant -> stay resident in VMEM across tiles.
        in_specs.append(pl.BlockSpec((pfi, pfo), lambda i: (0, 0)))
        in_specs.append(pl.BlockSpec((1, pfo), lambda i: (0, 0)))
    out_spec = pl.BlockSpec((tm, OUTp), lambda i: (i, 0))

    kernel = functools.partial(
        _fused_mlp_kernel, relu_flags=relu_flags, compute_dtype=compute_dtype
    )

    # NOTE: for large hidden widths on v7x (64 MiB physical VMEM), additionally
    # tile the feature/contraction dims and set
    # pltpu.CompilerParams(vmem_limit_bytes=...) with an explicit budget.
    out = pl.pallas_call(
        kernel,
        out_shape=jax.ShapeDtypeStruct((Bp, OUTp), dtype),
        grid_spec=pltpu.PrefetchScalarGridSpec(
            num_scalar_prefetch=0,
            grid=grid,
            in_specs=in_specs,
            out_specs=out_spec,
        ),
        compiler_params=pltpu.CompilerParams(
            dimension_semantics=("parallel",),  # shard batch tiles across TCs (v7x)
        ),
    )(xp, *wb_inputs)

    return out[:B, :OUT]


def init_mlp_params(key, input_size, hidden_sizes, output_size, dtype=jnp.float32):
    """Deterministic params matching the PyTorch MLP layer order / shapes.

    Returns a list of (w [in,out], b [1,out], relu_after: bool) triples.
    """
    dims, relu_flags = [], []
    if len(hidden_sizes) > 0:
        dims.append((input_size, hidden_sizes[0]))        # no ReLU after first Linear
        relu_flags.append(False)
        for i in range(len(hidden_sizes) - 1):            # [Linear, ReLU] pairs
            dims.append((hidden_sizes[i], hidden_sizes[i + 1]))
            relu_flags.append(True)
        dims.append((hidden_sizes[-1], output_size))      # final Linear, no ReLU
        relu_flags.append(False)
    else:
        dims.append((input_size, output_size))
        relu_flags.append(False)

    params = []
    for (fan_in, fan_out), relu in zip(dims, relu_flags):
        key, kw, kb = jax.random.split(key, 3)
        bound = 1.0 / (fan_in ** 0.5)  # same scale as nn.Linear default init
        w = jax.random.uniform(kw, (fan_in, fan_out), dtype, -bound, bound)
        b = jax.random.uniform(kb, (1, fan_out), dtype, -bound, bound)
        params.append((w, b, relu))
    return params


def mlp_forward_ref(x, params):
    # Pure-JAX reference for correctness checking.
    for w, b, relu in params:
        x = x @ w + b
        if relu:
            x = jnp.maximum(x, 0.0)
    return x


if __name__ == "__main__":
    # Small shapes consistent with the module: batch=8, input=16, hidden=[32,32], output=8
    batch, input_size, hidden_sizes, output_size = 8, 16, [32, 32], 8

    key = jax.random.PRNGKey(0)
    kx, kp = jax.random.split(key)
    x = jax.random.normal(kx, (batch, input_size), jnp.float32)
    params = init_mlp_params(kp, input_size, hidden_sizes, output_size)

    out = mlp_forward(x, params)
    out = jax.block_until_ready(out)

    ref = mlp_forward_ref(x, params)
    assert out.shape == (batch, output_size)
    assert jnp.allclose(out, ref, atol=1e-5, rtol=1e-5), "mismatch vs reference"

    # Also exercise the no-hidden-layer path (single Linear).
    params1 = init_mlp_params(jax.random.PRNGKey(1), input_size, [], output_size)
    out1 = jax.block_until_ready(mlp_forward(x, params1))
    ref1 = mlp_forward_ref(x, params1)
    assert jnp.allclose(out1, ref1, atol=1e-5, rtol=1e-5), "mismatch vs reference (k=0)"

    print("KERNEL_OK")
</pallas_src>

<mosaic_0001>
module attributes {stable_mosaic.version = 11 : i64} {
  func.func @_fused_mlp_kernel(%arg0: i32, %arg1: memref<8x128xf32, #tpu.memory_space<vmem>>, %arg2: memref<128x128xf32, #tpu.memory_space<vmem>>, %arg3: memref<1x128xf32, #tpu.memory_space<vmem>>, %arg4: memref<128x128xf32, #tpu.memory_space<vmem>>, %arg5: memref<1x128xf32, #tpu.memory_space<vmem>>, %arg6: memref<128x128xf32, #tpu.memory_space<vmem>>, %arg7: memref<1x128xf32, #tpu.memory_space<vmem>>, %arg8: memref<8x128xf32, #tpu.memory_space<vmem>>) attributes {dimension_semantics = [#tpu.dimension_semantics<parallel>], iteration_bounds = array<i64: 1>, scalar_prefetch = 0 : i64, scratch_operands = 0 : i64, tpu.core_type = #tpu.core_type<tc>, window_params = [{transform_indices = @transform_0, window_bounds = array<i64: 8, 128>}, {pipeline_mode = #tpu.pipeline_mode<synchronous>, transform_indices = @transform_1, window_bounds = array<i64: 128, 128>}, {pipeline_mode = #tpu.pipeline_mode<synchronous>, transform_indices = @transform_2, window_bounds = array<i64: 1, 128>}, {pipeline_mode = #tpu.pipeline_mode<synchronous>, transform_indices = @transform_3, window_bounds = array<i64: 128, 128>}, {pipeline_mode = #tpu.pipeline_mode<synchronous>, transform_indices = @transform_4, window_bounds = array<i64: 1, 128>}, {pipeline_mode = #tpu.pipeline_mode<synchronous>, transform_indices = @transform_5, window_bounds = array<i64: 128, 128>}, {pipeline_mode = #tpu.pipeline_mode<synchronous>, transform_indices = @transform_6, window_bounds = array<i64: 1, 128>}, {transform_indices = @transform_7, window_bounds = array<i64: 8, 128>}]} {
    %c0 = arith.constant 0 : index
    %c0_0 = arith.constant 0 : index
    %0 = vector.load %arg1[%c0, %c0_0] : memref<8x128xf32, #tpu.memory_space<vmem>>, vector<8x128xf32>
    %c0_1 = arith.constant 0 : index
    %c0_2 = arith.constant 0 : index
    %1 = vector.load %arg2[%c0_1, %c0_2] : memref<128x128xf32, #tpu.memory_space<vmem>>, vector<128x128xf32>
    %cst = arith.constant dense<0.000000e+00> : vector<8x128xf32>
    %2 = tpu.matmul %0, %1, %cst {dimension_numbers = #tpu.dot_dimension_numbers<[1], [0], [0], [1], [0, 0, 1, 1], [], []>} : vector<8x128xf32>, vector<128x128xf32>, vector<8x128xf32> -> vector<8x128xf32>
    %c0_3 = arith.constant 0 : index
    %c0_4 = arith.constant 0 : index
    %3 = vector.load %arg3[%c0_3, %c0_4] : memref<1x128xf32, #tpu.memory_space<vmem>>, vector<1x128xf32>
    %4 = vector.broadcast %3 : vector<1x128xf32> to vector<8x128xf32>
    %5 = arith.addf %2, %4 : vector<8x128xf32>
    %c0_5 = arith.constant 0 : index
    %c0_6 = arith.constant 0 : index
    %6 = vector.load %arg4[%c0_5, %c0_6] : memref<128x128xf32, #tpu.memory_space<vmem>>, vector<128x128xf32>
    %cst_7 = arith.constant dense<0.000000e+00> : vector<8x128xf32>
    %7 = tpu.matmul %5, %6, %cst_7 {dimension_numbers = #tpu.dot_dimension_numbers<[1], [0], [0], [1], [0, 0, 1, 1], [], []>} : vector<8x128xf32>, vector<128x128xf32>, vector<8x128xf32> -> vector<8x128xf32>
    %c0_8 = arith.constant 0 : index
    %c0_9 = arith.constant 0 : index
    %8 = vector.load %arg5[%c0_8, %c0_9] : memref<1x128xf32, #tpu.memory_space<vmem>>, vector<1x128xf32>
    %9 = vector.broadcast %8 : vector<1x128xf32> to vector<8x128xf32>
    %10 = arith.addf %7, %9 : vector<8x128xf32>
    %cst_10 = arith.constant 0.000000e+00 : f32
    %11 = vector.broadcast %cst_10 : f32 to vector<8x128xf32>
    %12 = arith.maximumf %10, %11 : vector<8x128xf32>
    %c0_11 = arith.constant 0 : index
    %c0_12 = arith.constant 0 : index
    %13 = vector.load %arg6[%c0_11, %c0_12] : memref<128x128xf32, #tpu.memory_space<vmem>>, vector<128x128xf32>
    %cst_13 = arith.constant dense<0.000000e+00> : vector<8x128xf32>
    %14 = tpu.matmul %12, %13, %cst_13 {dimension_numbers = #tpu.dot_dimension_numbers<[1], [0], [0], [1], [0, 0, 1, 1], [], []>} : vector<8x128xf32>, vector<128x128xf32>, vector<8x128xf32> -> vector<8x128xf32>
    %c0_14 = arith.constant 0 : index
    %c0_15 = arith.constant 0 : index
    %15 = vector.load %arg7[%c0_14, %c0_15] : memref<1x128xf32, #tpu.memory_space<vmem>>, vector<1x128xf32>
    %16 = vector.broadcast %15 : vector<1x128xf32> to vector<8x128xf32>
    %17 = arith.addf %14, %16 : vector<8x128xf32>
    %c0_16 = arith.constant 0 : index
    %c0_17 = arith.constant 0 : index
    %18 = vector.load %arg8[%c0_16, %c0_17] : memref<8x128xf32, #tpu.memory_space<vmem>>, vector<8x128xf32>
    tpu.vector_store %arg8[%c0_16, %c0_17], %17 {strides = array<i32>} : memref<8x128xf32, #tpu.memory_space<vmem>>, vector<8x128xf32>,
    return
  }
  func.func @transform_0(%arg0: i32) -> (i32, i32) {
    %c0_i32 = arith.constant 0 : i32
    %c0_i32_0 = arith.constant 0 : i32
    return %arg0, %c0_i32 : i32, i32
  }
  func.func @transform_1(%arg0: i32) -> (i32, i32) {
    %c0_i32 = arith.constant 0 : i32
    %c0_i32_0 = arith.constant 0 : i32
    %c0_i32_1 = arith.constant 0 : i32
    return %c0_i32, %c0_i32_0 : i32, i32
  }
  func.func @transform_2(%arg0: i32) -> (i32, i32) {
    %c0_i32 = arith.constant 0 : i32
    %c0_i32_0 = arith.constant 0 : i32
    %c0_i32_1 = arith.constant 0 : i32
    return %c0_i32, %c0_i32_0 : i32, i32
  }
  func.func @transform_3(%arg0: i32) -> (i32, i32) {
    %c0_i32 = arith.constant 0 : i32
    %c0_i32_0 = arith.constant 0 : i32
    %c0_i32_1 = arith.constant 0 : i32
    return %c0_i32, %c0_i32_0 : i32, i32
  }
  func.func @transform_4(%arg0: i32) -> (i32, i32) {
    %c0_i32 = arith.constant 0 : i32
    %c0_i32_0 = arith.constant 0 : i32
    %c0_i32_1 = arith.constant 0 : i32
    return %c0_i32, %c0_i32_0 : i32, i32
  }
  func.func @transform_5(%arg0: i32) -> (i32, i32) {
    %c0_i32 = arith.constant 0 : i32
    %c0_i32_0 = arith.constant 0 : i32
    %c0_i32_1 = arith.constant 0 : i32
    return %c0_i32, %c0_i32_0 : i32, i32
  }
  func.func @transform_6(%arg0: i32) -> (i32, i32) {
    %c0_i32 = arith.constant 0 : i32
    %c0_i32_0 = arith.constant 0 : i32
    %c0_i32_1 = arith.constant 0 : i32
    return %c0_i32, %c0_i32_0 : i32, i32
  }
  func.func @transform_7(%arg0: i32) -> (i32, i32) {
    %c0_i32 = arith.constant 0 : i32
    %c0_i32_0 = arith.constant 0 : i32
    return %arg0, %c0_i32 : i32, i32
  }
}

</mosaic_0001>

<bundles_post_ra>
// kernel: tpu_custom_call.1
= control target key start
LH: loop header
LB: loop body
LE: loop exit
PB: predicated region body
PF: predicated region fallthrough
CT: control target
= control target key end

     0   :  { %12 = vsyncpa [#allocation3], 0  ;;  %s791_s0 = inlined_call_operand.hbm [shape: f32[8,128], index: 0, kind: input, shape index: {}]   ;;  %s792_s1 = inlined_call_operand.hbm [shape: f32[128,128], index: 1, kind: input, shape index: {}]   ;;  %s793_s2 = inlined_call_operand.vmem [shape: f32[1,128], index: 2, kind: input, shape index: {}]   ;;  %s794_s3 = inlined_call_operand.hbm [shape: f32[128,128], index: 3, kind: input, shape index: {}]   ;;  %s795_s4 = inlined_call_operand.vmem [shape: f32[1,128], index: 4, kind: input, shape index: {}]   ;;  %s796_s5 = inlined_call_operand.hbm [shape: f32[128,128], index: 5, kind: input, shape index: {}]   ;;  %s797_s6 = inlined_call_operand.vmem [shape: f32[1,128], index: 6, kind: input, shape index: {}]   ;;  %s798_s7 = inlined_call_operand.hbm [shape: f32[8,128], index: 7, kind: output, shape index: {}]  }
   0x1   :  { %13 = vsyncpa [#allocation6], 0 }
   0x2   :  { %14 = vsyncpa [#allocation9], 0 }
   0x3   :  { %15 = vsyncpa [#allocation4], 0  ;;  %s655_s24 = smov [#allocation5]  }
   0x4   :  { %s31_s25 = sshll.u32 %s655_s24, 4  ;;  %s32_s25 = int_to_ptr.vmem [resolvable:$true] %s31_s25 }
   0x5   :  { %s555_s26 = scalar_lea.vmem %s32_s25, 2048  ;;  %p560_p1 = scmp.lt.s32.totalorder %s32_s25, %s32_s25 }
   0x6   :  { %p556_p0 = scmp.ne.s32.totalorder %s32_s25, %s555_s26  ;;  %p561_p2 = scmp.lt.s32.totalorder %s555_s26, %s555_s26 }
   0x8   :  { %p562_p3 = por %p561_p2, %p560_p1 }
   0xa   :  { %p563_p4 = pnand %p562_p3, %p556_p0 }
   0xc   :  { %566 = shalt.err (!%p563_p4)
}
   0xd   :  { %s656_s27 = smov 128   ;;  %s657_s28 = smov 8  }
   0xe   :  { %37 = dma.hbm_to_vmem [thread:$0]  %s792_s1, 2048, %s32_s25, [#allocation6], %s656_s27, %s656_s27, %s657_s28  }
   0xf   :  { %s658_s8 = smov [#allocation2]   ;;  %s659_s10 = smov [#allocation7]  }
  0x10   :  { %s22_s9 = sshll.u32 %s658_s8, 4  ;;  %s45_s11 = sshll.u32 %s659_s10, 4  ;;  %s23_s9 = int_to_ptr.vmem [resolvable:$true] %s22_s9  ;;  %s46_s11 = int_to_ptr.vmem [resolvable:$true] %s45_s11 }
  0x11   :  { %s575_s12 = scalar_lea.vmem %s23_s9, 128  ;;  %p580_p6 = scmp.lt.s32.totalorder %s23_s9, %s23_s9 }
  0x12   :  { %p576_p5 = scmp.ne.s32.totalorder %s23_s9, %s575_s12  ;;  %p581_p7 = scmp.lt.s32.totalorder %s575_s12, %s575_s12 }
  0x14   :  { %p582_p8 = por %p581_p7, %p580_p6 }
  0x16   :  { %p583_p9 = pnand %p582_p8, %p576_p5 }
  0x18   :  { %586 = shalt.err (!%p583_p9)
}
  0x19   :  { %25 = dma.hbm_to_vmem [thread:$0]  %s791_s0, 128, %s23_s9, [#allocation3]  }
  0x1a   :  { %s595_s15 = scalar_lea.vmem %s46_s11, 2048  ;;  %p600_p11 = scmp.lt.s32.totalorder %s46_s11, %s46_s11 }
  0x1b   :  { %p596_p10 = scmp.ne.s32.totalorder %s46_s11, %s595_s15  ;;  %p601_p12 = scmp.lt.s32.totalorder %s595_s15, %s595_s15 }
  0x1d   :  { %p602_p13 = por %p601_p12, %p600_p11 }
  0x1f   :  { %p603_p0 = pnand %p602_p13, %p596_p10 }
  0x21   :  { %606 = shalt.err (!%p603_p0)
}
  0x22   :  { %51 = dma.hbm_to_vmem [thread:$0]  %s794_s3, 2048, %s46_s11, [#allocation6], %s656_s27, %s656_s27, %s657_s28  }
  0x23   :  { %s660_s17 = smov [#allocation8]  }
  0x24   :  { %s59_s18 = sshll.u32 %s660_s17, 4  ;;  %s60_s18 = int_to_ptr.vmem [resolvable:$true] %s59_s18 }
  0x25   :  { %s615_s19 = scalar_lea.vmem %s60_s18, 2048  ;;  %p620_p2 = scmp.lt.s32.totalorder %s60_s18, %s60_s18 }
  0x26   :  { %p616_p1 = scmp.ne.s32.totalorder %s60_s18, %s615_s19  ;;  %p621_p3 = scmp.lt.s32.totalorder %s615_s19, %s615_s19 }
  0x28   :  { %p622_p4 = por %p621_p3, %p620_p2 }
  0x2a   :  { %p623_p5 = pnand %p622_p4, %p616_p1 }
  0x2c   :  { %626 = shalt.err (!%p623_p5)
}
  0x2d   :  { %65 = dma.hbm_to_vmem [thread:$0]  %s796_s5, 2048, %s60_s18, [#allocation9], %s656_s27, %s656_s27, %s657_s28  }
  0x2e   :  { %647 = dma.done.wait [#allocation3], 128  }
  0x2f   :  { %648 = vsyncadd [#allocation3], 4294967168 }
  0x30   :  { %649 = dma.done.wait [#allocation6], 4096  }
  0x31   :  { %650 = vsyncadd [#allocation6], 4294963200 }
  0x32   :  { %651 = dma.done.wait [#allocation9], 2048  }
  0x33   :  { %652 = vsyncadd [#allocation9], 4294965248  ;;  %v661_v0 = vmov 0.0   ;;  %vm662_vm0 = vmmov 0   ;;  %v96_v1 = vld [vmem:[#allocation5 + $0x78] sm:$0xff]  ;;  %v95_v2 = vld [vmem:[#allocation5 + $0x70] sm:$0xff] }
  0x34   :  { %433 = vmatprep.subr.mxu0 %v661_v0  ;;  %465 = vmatprep.mubr.msk.f32.mxu0 %vm662_vm0, %v661_v0  ;;  %v94_v3 = vld [vmem:[#allocation5 + $0x68] sm:$0xff]  ;;  %v93_v4 = vld [vmem:[#allocation5 + $0x60] sm:$0xff]  ;;  %v189_v5 = vld [vmem:[#allocation7 + $0x78] sm:$0xff]  ;;  %s663_s24 = smov [#allocation10]  }
  0x35   :  { %468 = vmatprep.subr.mxu1 %v661_v0  ;;  %500 = vmatprep.mubr.msk.f32.mxu1 %vm662_vm0, %v661_v0  ;;  %v92_v6 = vld [vmem:[#allocation5 + $0x58] sm:$0xff]  ;;  %v188_v7 = vld [vmem:[#allocation7 + $0x70] sm:$0xff]  ;;  %v187_v8 = vld [vmem:[#allocation7 + $0x68] sm:$0xff]  ;;  %s368_s25 = sshll.u32 %s663_s24, 4  ;;  %s369_s25 = int_to_ptr.vmem [resolvable:$true] %s368_s25 }
  0x36   :  { %434 = vmatpush3.msra.mxu0 %v96_v1  ;;  %469 = vmatpush3.msra.mxu1 %v189_v5  ;;  %v91_v9 = vld [vmem:[#allocation5 + $0x50] sm:$0xff]  ;;  %v186_v10 = vld [vmem:[#allocation7 + $0x60] sm:$0xff]  ;;  %v90_v11 = vld [vmem:[#allocation5 + $0x48] sm:$0xff]  ;;  %s627_s26 = scalar_lea.vmem %s369_s25, 128  ;;  %p632_p7 = scmp.lt.s32.totalorder %s369_s25, %s369_s25 }
  0x37   :  { %435 = vmatprep.subr.mxu0 %v661_v0  ;;  %470 = vmatprep.subr.mxu1 %v661_v0  ;;  %v185_v12 = vld [vmem:[#allocation7 + $0x58] sm:$0xff]  ;;  %v89_v13 = vld [vmem:[#allocation5 + $0x40] sm:$0xff]  ;;  %v184_v14 = vld [vmem:[#allocation7 + $0x50] sm:$0xff]  ;;  %p628_p6 = scmp.ne.s32.totalorder %s369_s25, %s627_s26  ;;  %p633_p8 = scmp.lt.s32.totalorder %s627_s26, %s627_s26 }
  0x38   :  { %436 = vmatpush3.msra.mxu0 %v95_v2  ;;  %471 = vmatpush3.msra.mxu1 %v188_v7  ;;  %v88_v15 = vld [vmem:[#allocation5 + $0x38] sm:$0xff]  ;;  %v183_v16 = vld [vmem:[#allocation7 + $0x48] sm:$0xff]  ;;  %v87_v17 = vld [vmem:[#allocation5 + $0x30] sm:$0xff] }
  0x39   :  { %437 = vmatprep.subr.mxu0 %v661_v0  ;;  %472 = vmatprep.subr.mxu1 %v661_v0  ;;  %v182_v18 = vld [vmem:[#allocation7 + $0x40] sm:$0xff]  ;;  %v86_v19 = vld [vmem:[#allocation5 + $0x28] sm:$0xff]  ;;  %v181_v20 = vld [vmem:[#allocation7 + $0x38] sm:$0xff]  ;;  %p634_p9 = por %p633_p8, %p632_p7 }
  0x3a   :  { %438 = vmatpush3.msra.mxu0 %v94_v3  ;;  %473 = vmatpush3.msra.mxu1 %v187_v8  ;;  %v85_v21 = vld [vmem:[#allocation5 + $0x20] sm:$0xff]  ;;  %v180_v22 = vld [vmem:[#allocation7 + $0x30] sm:$0xff]  ;;  %v84_v23 = vld [vmem:[#allocation5 + $0x18] sm:$0xff] }
  0x3b   :  { %439 = vmatprep.subr.mxu0 %v661_v0  ;;  %474 = vmatprep.subr.mxu1 %v661_v0  ;;  %v179_v24 = vld [vmem:[#allocation7 + $0x28] sm:$0xff]  ;;  %v83_v25 = vld [vmem:[#allocation5 + $0x10] sm:$0xff]  ;;  %v178_v26 = vld [vmem:[#allocation7 + $0x20] sm:$0xff]  ;;  %p635_p10 = pnand %p634_p9, %p628_p6 }
  0x3c   :  { %440 = vmatpush3.msra.mxu0 %v93_v4  ;;  %475 = vmatpush3.msra.mxu1 %v186_v10  ;;  %v82_v27 = vld [vmem:[#allocation5 + $0x8] sm:$0xff]  ;;  %v177_v28 = vld [vmem:[#allocation7 + $0x18] sm:$0xff]  ;;  %v81_v29 = vld [vmem:[#allocation5] sm:$0xff] }
  0x3d   :  { %441 = vmatprep.subr.mxu0 %v661_v0  ;;  %476 = vmatprep.subr.mxu1 %v661_v0  ;;  %v80_v30 = vld [vmem:[#allocation2] sm:$0xff]  ;;  %v176_v31 = vld [vmem:[#allocation7 + $0x10] sm:$0xff]  ;;  %v175_v32 = vld [vmem:[#allocation7 + $0x8] sm:$0xff] }
  0x3e   :  { %442 = vmatpush3.msra.mxu0 %v92_v6  ;;  %477 = vmatpush3.msra.mxu1 %v185_v12  ;;  %v174_v33 = vld [vmem:[#allocation7] sm:$0xff]  ;;  %v283_v34 = vld [vmem:[#allocation8 + $0x78] sm:$0xff]  ;;  %v282_v35 = vld [vmem:[#allocation8 + $0x70] sm:$0xff] }
  0x3f   :  { %443 = vmatprep.subr.mxu0 %v661_v0  ;;  %478 = vmatprep.subr.mxu1 %v661_v0  ;;  %v281_v36 = vld [vmem:[#allocation8 + $0x68] sm:$0xff]  ;;  %v280_v37 = vld [vmem:[#allocation8 + $0x60] sm:$0xff]  ;;  %v279_v38 = vld [vmem:[#allocation8 + $0x58] sm:$0xff] }
  0x40   :  { %444 = vmatpush3.msra.mxu0 %v91_v9  ;;  %479 = vmatpush3.msra.mxu1 %v184_v14  ;;  %v278_v39 = vld [vmem:[#allocation8 + $0x50] sm:$0xff]  ;;  %v277_v40 = vld [vmem:[#allocation8 + $0x48] sm:$0xff]  ;;  %v276_v41 = vld [vmem:[#allocation8 + $0x40] sm:$0xff] }
  0x41   :  { %445 = vmatprep.subr.mxu0 %v661_v0  ;;  %480 = vmatprep.subr.mxu1 %v661_v0  ;;  %v275_v42 = vld [vmem:[#allocation8 + $0x38] sm:$0xff]  ;;  %v274_v43 = vld [vmem:[#allocation8 + $0x30] sm:$0xff]  ;;  %v273_v44 = vld [vmem:[#allocation8 + $0x28] sm:$0xff] }
  0x42   :  { %446 = vmatpush3.msra.mxu0 %v90_v11  ;;  %481 = vmatpush3.msra.mxu1 %v183_v16  ;;  %v272_v45 = vld [vmem:[#allocation8 + $0x20] sm:$0xff]  ;;  %v271_v46 = vld [vmem:[#allocation8 + $0x18] sm:$0xff]  ;;  %v270_v51 = vld [vmem:[#allocation8 + $0x10] sm:$0xff] }
  0x43   :  { %447 = vmatprep.subr.mxu0 %v661_v0  ;;  %482 = vmatprep.subr.mxu1 %v661_v0  ;;  %v379_v47 = vld [vmem:[%s793_s2] ss:$0 sm:$0xff]  ;;  %v269_v52 = vld [vmem:[#allocation8 + $0x8] sm:$0xff]  ;;  %v268_v53 = vld [vmem:[#allocation8] sm:$0xff] }
  0x44   :  { %448 = vmatpush3.msra.mxu0 %v89_v13  ;;  %483 = vmatpush3.msra.mxu1 %v182_v18  ;;  %v380_v54 = vld [vmem:[%s795_s4] ss:$0 sm:$0xff] }
  0x45   :  { %449 = vmatprep.subr.mxu0 %v661_v0  ;;  %484 = vmatprep.subr.mxu1 %v661_v0  ;;  %v381_v59 = vld [vmem:[%s797_s6] ss:$0 sm:$0xff] }
  0x46   :  { %450 = vmatpush3.msra.mxu0 %v88_v15  ;;  %485 = vmatpush3.msra.mxu1 %v181_v20 }
  0x47   :  { %451 = vmatprep.subr.mxu0 %v661_v0  ;;  %486 = vmatprep.subr.mxu1 %v661_v0 }
  0x48   :  { %452 = vmatpush3.msra.mxu0 %v87_v17  ;;  %487 = vmatpush3.msra.mxu1 %v180_v22 }
  0x49   :  { %453 = vmatprep.subr.mxu0 %v661_v0  ;;  %488 = vmatprep.subr.mxu1 %v661_v0 }
  0x4a   :  { %454 = vmatpush3.msra.mxu0 %v86_v19  ;;  %489 = vmatpush3.msra.mxu1 %v179_v24 }
  0x4b   :  { %455 = vmatprep.subr.mxu0 %v661_v0  ;;  %490 = vmatprep.subr.mxu1 %v661_v0 }
  0x4c   :  { %456 = vmatpush3.msra.mxu0 %v85_v21  ;;  %491 = vmatpush3.msra.mxu1 %v178_v26 }
  0x4d   :  { %457 = vmatprep.subr.mxu0 %v661_v0  ;;  %492 = vmatprep.subr.mxu1 %v661_v0 }
  0x4e   :  { %458 = vmatpush3.msra.mxu0 %v84_v23  ;;  %493 = vmatpush3.msra.mxu1 %v177_v28 }
  0x4f   :  { %459 = vmatprep.subr.mxu0 %v661_v0  ;;  %494 = vmatprep.subr.mxu1 %v661_v0 }
  0x50   :  { %460 = vmatpush3.msra.mxu0 %v83_v25  ;;  %495 = vmatpush3.msra.mxu1 %v176_v31 }
  0x51   :  { %461 = vmatprep.subr.mxu0 %v661_v0  ;;  %496 = vmatprep.subr.mxu1 %v661_v0 }
  0x52   :  { %462 = vmatpush3.msra.mxu0 %v82_v27  ;;  %497 = vmatpush3.msra.mxu1 %v175_v32 }
  0x53   :  { %463 = vmatprep.subr.mxu0 %v661_v0  ;;  %498 = vmatprep.subr.mxu1 %v661_v0 }
  0x54   :  { %464 = vmatpush3.msra.mxu0 %v81_v29  ;;  %499 = vmatpush3.msra.mxu1 %v174_v33 }
  0x55   :  { %466 = vmatmul.mubr.f32.vlgmr.msra.gmra.mxu0 %v80_v30  ;;  %503 = vmatprep.subr.mxu0 %v661_v0 }
  0x56   :  { %535 = vmatprep.mubr.msk.f32.mxu0 %vm662_vm0, %v661_v0  ;;  %504 = vmatpush3.msra.mxu0 %v283_v34 }
  0x57   :  { %505 = vmatprep.subr.mxu0 %v661_v0 }
  0x58   :  { %506 = vmatpush3.msra.mxu0 %v282_v35 }
  0x59   :  { %507 = vmatprep.subr.mxu0 %v661_v0 }
  0x5a   :  { %508 = vmatpush3.msra.mxu0 %v281_v36 }
  0x5b   :  { %509 = vmatprep.subr.mxu0 %v661_v0 }
  0x5c   :  { %510 = vmatpush3.msra.mxu0 %v280_v37 }
  0x5d   :  { %511 = vmatprep.subr.mxu0 %v661_v0 }
  0x5e   :  { %512 = vmatpush3.msra.mxu0 %v279_v38 }
  0x5f   :  { %513 = vmatprep.subr.mxu0 %v661_v0 }
  0x60   :  { %514 = vmatpush3.msra.mxu0 %v278_v39 }
  0x61   :  { %515 = vmatprep.subr.mxu0 %v661_v0 }
  0x62   :  { %516 = vmatpush3.msra.mxu0 %v277_v40 }
  0x63   :  { %517 = vmatprep.subr.mxu0 %v661_v0 }
  0x64   :  { %518 = vmatpush3.msra.mxu0 %v276_v41 }
  0x65   :  { %519 = vmatprep.subr.mxu0 %v661_v0 }
  0x66   :  { %520 = vmatpush3.msra.mxu0 %v275_v42 }
  0x67   :  { %521 = vmatprep.subr.mxu0 %v661_v0 }
  0x68   :  { %522 = vmatpush3.msra.mxu0 %v274_v43 }
  0x69   :  { %523 = vmatprep.subr.mxu0 %v661_v0 }
  0x6a   :  { %524 = vmatpush3.msra.mxu0 %v273_v44 }
  0x6b   :  { %525 = vmatprep.subr.mxu0 %v661_v0 }
  0x6c   :  { %526 = vmatpush3.msra.mxu0 %v272_v45 }
  0x6d   :  { %527 = vmatprep.subr.mxu0 %v661_v0 }
  0x6e   :  { %528 = vmatpush3.msra.mxu0 %v271_v46 }
  0x6f   :  { %529 = vmatprep.subr.mxu0 %v661_v0 }
  0x70   :  { %530 = vmatpush3.msra.mxu0 %v270_v51 }
  0x71   :  { %531 = vmatprep.subr.mxu0 %v661_v0 }
  0x72   :  { %532 = vmatpush3.msra.mxu0 %v269_v52 }
  0x73   :  { %533 = vmatprep.subr.mxu0 %v661_v0 }
  0x74   :  { %534 = vmatpush3.msra.mxu0 %v268_v53 }
 0x115   :  { %v170_v48 = vpop.f32.mrf.mxu0 }
 0x116   :  { %v171_v49 = vadd.f32 %v379_v47, %v170_v48 }
 0x117   :  { %v467_v50 = vpop.f32.mrf.mxu0 }
 0x118   :  { %501 = vmatmul.mubr.f32.vlgmr.msra.gmra.mxu1 %v171_v49 }
 0x1d8   :  { %v263_v55 = vpop.f32.mrf.mxu1 }
 0x1d9   :  { %v264_v56 = vadd.f32 %v380_v54, %v263_v55 }
 0x1da   :  { %v502_v57 = vpop.f32.mrf.mxu1 }
 0x1db   :  { %v267_v58 = vmax.f32 %v264_v56, 0.0 }
 0x1dd   :  { %536 = vmatmul.mubr.f32.vlgmr.msra.gmra.mxu0 %v267_v58 }
 0x29d   :  { %v357_v60 = vpop.f32.mrf.mxu0 }
 0x29e   :  { %v358_v61 = vadd.f32 %v381_v59, %v357_v60 }
 0x29f   :  { %v537_v62 = vpop.f32.mrf.mxu0 }
 0x2a0   :  { %361 = vst [vmem:[#allocation10] sm:$0xff] %v358_v61 }
 0x2a1   :  { %638 = shalt.err (!%p635_p10)
}
 0x2a2   :  { %371 = dma.vmem_to_hbm [thread:$0]  %s369_s25, 128, %s798_s7, [#allocation4]  }
 0x2a3   :  { %653 = dma.done.wait [#allocation4], 128  }
 0x2a4   :  { %654 = vsyncadd [#allocation4], 4294967168 }
 0x2a5   :  { %375 = vsyncpa [#allocation3], 1 }
 0x2a6   :  { %376 = vsyncpa [#allocation6], 1 }
 0x2a7   :  { %377 = vsyncpa [#allocation9], 1 }
 0x2a8   :  { %378 = vsyncpa [#allocation4], 1 }

</bundles_post_ra>
